<compile_context>
chip_gen: v7x
topology: tpu7x:2x2x1
jax: 0.10.0
libtpu: 0.0.40
codegen_flags: <defaults>
</compile_context>

<pallas_src>
import math

import jax
import jax.numpy as jnp
from jax.experimental import pallas as pl
from jax.experimental.pallas import tpu as pltpu


def _round_up(x: int, m: int) -> int:
    return ((x + m - 1) // m) * m


def _pe_kernel(x_ref, w_ref, o_ref):
    # x_ref: (tm, D+1)  rows of box vectors with a trailing ones column
    # w_ref: (D+1, D*d_model)  block-diagonal freq scatter + phase bias row
    # o_ref: (tm, D*d_model)
    arg = jnp.dot(
        x_ref[...],
        w_ref[...],
        preferred_element_type=jnp.float32,
        precision=jax.lax.Precision.HIGHEST,
    )
    # Single transcendental per element: cos(x) == sin(x + pi/2), the pi/2
    # phase was already added by the matmul bias row.
    o_ref[...] = jnp.sin(arg).astype(o_ref.dtype)


def positional_encoding(box_vec: jax.Array, d_model: int, *, tm: int = 4096) -> jax.Array:
    """Pallas implementation of PositionalEncoding.forward.

    Call under jax.jit with static d_model/tm so the constants below
    (exp / eye / where / concatenate) are folded once, not rebuilt per call.
    """
    B, K, D = box_vec.shape
    assert d_model % 2 == 0, "d_model must be even"
    out_dim = D * d_model

    # --- constants (plain JAX glue; constant-folded under jit) ---
    freq = jnp.exp(
        -jnp.arange(0, d_model, 2, dtype=jnp.float32) * (math.log(10000.0) / d_model)
    )  # (d_model//2,)
    row = jnp.repeat(freq, 2)  # (d_model,) interleaved sin/cos frequencies
    # Block-diagonal scatter: W_freq[d, d*d_model + j] = row[j]
    w_freq = (jnp.eye(D, dtype=jnp.float32)[:, :, None] * row[None, None, :]).reshape(D, out_dim)
    # Per-column phase row (bias): 0 for even (sin) columns, pi/2 for odd (cos).
    col = jnp.arange(out_dim, dtype=jnp.int32)
    phase = jnp.where(
        (col % 2) == 1, jnp.float32(math.pi / 2.0), jnp.float32(0.0)
    ).reshape(1, out_dim)
    w_aug = jnp.concatenate([w_freq, phase], axis=0)  # (D+1, out_dim)

    # Flatten (B, K) -> rows and append the ones column that activates the
    # phase bias row of w_aug.  Input is tiny (13 f32 lanes/row) vs the
    # 384-lane output, so this concat is negligible HBM traffic.
    N = B * K
    x = box_vec.reshape(N, D).astype(jnp.float32)
    x_aug = jnp.concatenate([x, jnp.ones((N, 1), jnp.float32)], axis=1)  # (N, D+1)

    # Tile choice: multiple of 8; capped so the grid has >= 2 steps (v7x has
    # 2 TensorCores and "parallel" shards the row axis across them).  The
    # last block may be ragged — no host-side pad, no post-kernel slice.
    tm_eff = max(8, min(tm, _round_up(pl.cdiv(N, 2), 8)))
    grid = (pl.cdiv(N, tm_eff),)

    out = pl.pallas_call(
        _pe_kernel,
        out_shape=jax.ShapeDtypeStruct((N, out_dim), jnp.float32),
        grid_spec=pltpu.PrefetchScalarGridSpec(
            num_scalar_prefetch=0,
            grid=grid,
            in_specs=[
                pl.BlockSpec((tm_eff, D + 1), lambda i: (i, 0)),
                # Constant weight tile: same block every step -> stays VMEM-resident.
                pl.BlockSpec((D + 1, out_dim), lambda i: (0, 0)),
            ],
            out_specs=pl.BlockSpec((tm_eff, out_dim), lambda i: (i, 0)),
        ),
        compiler_params=pltpu.CompilerParams(
            dimension_semantics=("parallel",),
            # ~16 MiB used at tm=4096; 32 MiB is safe on v5e/v6e/v7x.  Raise to
            # ~64 MiB (and tm to 8192-16384) on v5e/v6e only when sweeping.
            vmem_limit_bytes=32 * 1024 * 1024,
        ),
    )(x_aug, w_aug)

    return out.reshape(B, K, out_dim)


def positional_encoding_ref(box_vec: jax.Array, d_model: int) -> jax.Array:
    """Pure-JAX reference matching the PyTorch forward exactly."""
    B, K, D = box_vec.shape
    pe = box_vec[..., None]  # (B, K, D, 1)
    freq = jnp.exp(
        -jnp.arange(0, d_model, 2, dtype=jnp.float32) * (math.log(10000.0) / d_model)
    ).reshape(1, 1, 1, -1)
    pe_sin = jnp.sin(pe * freq)
    pe_cos = jnp.cos(pe * freq)
    pe_stacked = jnp.stack((pe_sin, pe_cos), axis=-1)  # (B, K, D, half, 2)
    return pe_stacked.reshape(B, K, D * d_model)


if __name__ == "__main__":
    B, K, D = 2, 8, 12
    d_model = 32

    key = jax.random.PRNGKey(0)
    box_vec = jax.random.normal(key, (B, K, D), dtype=jnp.float32)

    pe_fn = jax.jit(positional_encoding, static_argnames=("d_model", "tm"))
    out = jax.block_until_ready(pe_fn(box_vec, d_model=d_model))

    ref = positional_encoding_ref(box_vec, d_model)
    assert out.shape == (B, K, D * d_model), out.shape
    assert jnp.allclose(out, ref, atol=1e-5, rtol=1e-5), float(jnp.max(jnp.abs(out - ref)))

    print("KERNEL_OK")
</pallas_src>

<mosaic_0001>
module attributes {stable_mosaic.version = 11 : i64} {
  func.func @_pe_kernel(%arg0: i32, %arg1: memref<8x13xf32, #tpu.memory_space<vmem>>, %arg2: memref<13x384xf32, #tpu.memory_space<vmem>>, %arg3: memref<8x384xf32, #tpu.memory_space<vmem>>) attributes {dimension_semantics = [#tpu.dimension_semantics<parallel>], iteration_bounds = array<i64: 2>, scalar_prefetch = 0 : i64, scratch_operands = 0 : i64, tpu.core_type = #tpu.core_type<tc>, window_params = [{transform_indices = @transform_0, window_bounds = array<i64: 8, 13>}, {pipeline_mode = #tpu.pipeline_mode<synchronous>, transform_indices = @transform_1, window_bounds = array<i64: 13, 384>}, {transform_indices = @transform_2, window_bounds = array<i64: 8, 384>}]} {
    %c0 = arith.constant 0 : index
    %c0_0 = arith.constant 0 : index
    %0 = vector.load %arg1[%c0, %c0_0] : memref<8x13xf32, #tpu.memory_space<vmem>>, vector<8x13xf32>
    %c0_1 = arith.constant 0 : index
    %c0_2 = arith.constant 0 : index
    %1 = vector.load %arg2[%c0_1, %c0_2] : memref<13x384xf32, #tpu.memory_space<vmem>>, vector<13x384xf32>
    %cst = arith.constant dense<0.000000e+00> : vector<8x384xf32>
    %2 = tpu.matmul %0, %1, %cst {dimension_numbers = #tpu.dot_dimension_numbers<[1], [0], [0], [1], [0, 0, 1, 1], [], []>, precision = #tpu.contract_precision<fp32>} : vector<8x13xf32>, vector<13x384xf32>, vector<8x384xf32> -> vector<8x384xf32>
    %3 = math.sin %2 : vector<8x384xf32>
    %c0_3 = arith.constant 0 : index
    %c0_4 = arith.constant 0 : index
    %4 = vector.load %arg3[%c0_3, %c0_4] : memref<8x384xf32, #tpu.memory_space<vmem>>, vector<8x384xf32>
    tpu.vector_store %arg3[%c0_3, %c0_4], %3 {strides = array<i32>} : memref<8x384xf32, #tpu.memory_space<vmem>>, vector<8x384xf32>,
    return
  }
  func.func @transform_0(%arg0: i32) -> (i32, i32) {
    %c0_i32 = arith.constant 0 : i32
    %c0_i32_0 = arith.constant 0 : i32
    return %arg0, %c0_i32 : i32, i32
  }
  func.func @transform_1(%arg0: i32) -> (i32, i32) {
    %c0_i32 = arith.constant 0 : i32
    %c0_i32_0 = arith.constant 0 : i32
    %c0_i32_1 = arith.constant 0 : i32
    return %c0_i32, %c0_i32_0 : i32, i32
  }
  func.func @transform_2(%arg0: i32) -> (i32, i32) {
    %c0_i32 = arith.constant 0 : i32
    %c0_i32_0 = arith.constant 0 : i32
    return %arg0, %c0_i32 : i32, i32
  }
}

</mosaic_0001>

<bundles_post_ra>
// kernel: mul.15
= control target key start
LH: loop header
LB: loop body
LE: loop exit
PB: predicated region body
PF: predicated region fallthrough
CT: control target
= control target key end

     0   :  { %s131_s10 = smov 30   ;;  %s132_s11 = smov 26   ;;  %vm3_vm0 = vcmask 15360   ;;  %vm9_vm1 = vcmask 261360   ;;  %vm15_vm2 = vcmask 244960   ;;  %vm21_vm3 = vcmask 228560   ;;  %s207_s0 = inlined_call_operand.vmem [shape: f32[16,2], index: 0, kind: input, shape index: {}]   ;;  %s208_s1 = inlined_call_operand.vmem [shape: f32[32], index: 1, kind: output, shape index: {}]  }
   0x1   :  { %v101_v0 = vld [vmem:[%s207_s0 + $0xf] sm:$0x1]   ;;  %v103_v1 = vld [vmem:[%s207_s0 + $0xd] sm:$0x1]   ;;  %v102_v2 = vld [vmem:[%s207_s0 + $0xe] sm:$0x1]  }
   0x2   :  { %7 = vrot.lane.b32.xlu0 %v101_v0, %s131_s10  ;;  %19 = vrot.lane.b32.xlu1 %v103_v1, %s132_s11  ;;  %v104_v3 = vld [vmem:[%s207_s0 + $0xc] sm:$0x1]   ;;  %s133_s16 = smov 28   ;;  %s134_s17 = smov 24   ;;  %v105_v4 = vld [vmem:[%s207_s0 + $0xb] sm:$0x1]  }
   0x3   :  { %v106_v5 = vld [vmem:[%s207_s0 + $0xa] sm:$0x1]   ;;  %v2_v6 = vld [vmem:[%s207_s0] sm:$0x1]   ;;  %s135_s24 = smov 22   ;;  %s136_s25 = smov 20  }
   0x4   :  { %4 = vst.msk [vmem:[#allocation0] sm:$0x1] %vm3_vm0, %v2_v6   ;;  %v107_v7 = vld [vmem:[%s207_s0 + $0x9] sm:$0x1]   ;;  %v108_v8 = vld [vmem:[%s207_s0 + $0x8] sm:$0x1]  }
   0x5   :  { %s137_s30 = smov 18   ;;  %s138_s2 = smov 16   ;;  %v109_v9 = vld [vmem:[%s207_s0 + $0x7] sm:$0x1]   ;;  %v110_v10 = vld [vmem:[%s207_s0 + $0x6] sm:$0x1]  }
   0x6   :  { %13 = vrot.lane.b32.xlu0 %v102_v2, %s133_s16  ;;  %25 = vrot.lane.b32.xlu1 %v104_v3, %s134_s17  ;;  %s139_s7 = smov 14   ;;  %s140_s8 = smov 12   ;;  %v111_v11 = vld [vmem:[%s207_s0 + $0x5] sm:$0x1]   ;;  %v112_v12 = vld [vmem:[%s207_s0 + $0x4] sm:$0x1]  }
   0x7   :  { %s141_s13 = smov 10   ;;  %s142_s14 = smov 8   ;;  %v113_v13 = vld [vmem:[%s207_s0 + $0x3] sm:$0x1]   ;;  %v114_v14 = vld [vmem:[%s207_s0 + $0x2] sm:$0x1]  }
   0x8   :  { %s143_s19 = smov 6   ;;  %s144_s20 = smov 4   ;;  %v115_v15 = vld [vmem:[%s207_s0 + $0x1] sm:$0x1]   ;;  %vm27_vm4 = vcmask 212160   ;;  %vm33_vm5 = vcmask 195760  }
   0x9   :  { %s145_s0 = smov 2   ;;  %vm39_vm6 = vcmask 179360   ;;  %vm45_vm7 = vcmask 162960   ;;  %vm51_vm8 = vcmask 146560   ;;  %vm57_vm9 = vcmask 130160  }
   0xa   :  { %31 = vrot.lane.b32.xlu0 %v105_v4, %s135_s24  ;;  %37 = vrot.lane.b32.xlu1 %v106_v5, %s136_s25  ;;  %vm63_vm10 = vcmask 113760   ;;  %vm69_vm11 = vcmask 97360   ;;  %vm75_vm12 = vcmask 80960   ;;  %vm81_vm13 = vcmask 64560  }
   0xb   :  { %vm87_vm14 = vcmask 48160   ;;  %vm93_vm15 = vcmask 31760  }
   0xe   :  { %43 = vrot.lane.b32.xlu0 %v107_v7, %s137_s30  ;;  %49 = vrot.lane.b32.xlu1 %v108_v8, %s138_s2 }
  0x12   :  { %55 = vrot.lane.b32.xlu0 %v109_v9, %s139_s7  ;;  %61 = vrot.lane.b32.xlu1 %v110_v10, %s140_s8 }
  0x16   :  { %67 = vrot.lane.b32.xlu0 %v111_v11, %s141_s13  ;;  %73 = vrot.lane.b32.xlu1 %v112_v12, %s142_s14 }
  0x1a   :  { %79 = vrot.lane.b32.xlu0 %v113_v13, %s143_s19  ;;  %85 = vrot.lane.b32.xlu1 %v114_v14, %s144_s20 }
  0x1e   :  { %91 = vrot.lane.b32.xlu0 %v115_v15, %s145_s0 }
  0x74   :  { %v8_v16 = vpop.permute.xlu0 %7   ;;  %v20_v17 = vpop.permute.xlu1 %19  }
  0x75   :  { %10 = vst.msk [vmem:[#allocation0] sm:$0x1] %vm9_vm1, %v8_v16  }
  0x78   :  { %v14_v18 = vpop.permute.xlu0 %13   ;;  %v26_v19 = vpop.permute.xlu1 %25  }
  0x79   :  { %16 = vst.msk [vmem:[#allocation0] sm:$0x1] %vm15_vm2, %v14_v18  }
  0x7a   :  { %22 = vst.msk [vmem:[#allocation0] sm:$0x1] %vm21_vm3, %v20_v17  }
  0x7b   :  { %28 = vst.msk [vmem:[#allocation0] sm:$0x1] %vm27_vm4, %v26_v19  }
  0x7c   :  { %v32_v20 = vpop.permute.xlu0 %31   ;;  %v38_v21 = vpop.permute.xlu1 %37  }
  0x7d   :  { %34 = vst.msk [vmem:[#allocation0] sm:$0x1] %vm33_vm5, %v32_v20  }
  0x7e   :  { %40 = vst.msk [vmem:[#allocation0] sm:$0x1] %vm39_vm6, %v38_v21  }
  0x80   :  { %v44_v22 = vpop.permute.xlu0 %43   ;;  %v50_v23 = vpop.permute.xlu1 %49  }
  0x81   :  { %46 = vst.msk [vmem:[#allocation0] sm:$0x1] %vm45_vm7, %v44_v22  }
  0x82   :  { %52 = vst.msk [vmem:[#allocation0] sm:$0x1] %vm51_vm8, %v50_v23  }
  0x84   :  { %v56_v24 = vpop.permute.xlu0 %55   ;;  %v62_v25 = vpop.permute.xlu1 %61  }
  0x85   :  { %58 = vst.msk [vmem:[#allocation0] sm:$0x1] %vm57_vm9, %v56_v24  }
  0x86   :  { %64 = vst.msk [vmem:[#allocation0] sm:$0x1] %vm63_vm10, %v62_v25  }
  0x88   :  { %v68_v26 = vpop.permute.xlu0 %67   ;;  %v74_v27 = vpop.permute.xlu1 %73  }
  0x89   :  { %70 = vst.msk [vmem:[#allocation0] sm:$0x1] %vm69_vm11, %v68_v26  }
  0x8a   :  { %76 = vst.msk [vmem:[#allocation0] sm:$0x1] %vm75_vm12, %v74_v27  }
  0x8c   :  { %v80_v28 = vpop.permute.xlu0 %79   ;;  %v86_v29 = vpop.permute.xlu1 %85  }
  0x8d   :  { %82 = vst.msk [vmem:[#allocation0] sm:$0x1] %vm81_vm13, %v80_v28  }
  0x8e   :  { %88 = vst.msk [vmem:[#allocation0] sm:$0x1] %vm87_vm14, %v86_v29  }
  0x90   :  { %v92_v30 = vpop.permute.xlu0 %91  }
  0x91   :  { %94 = vst.msk [vmem:[#allocation0] sm:$0x1] %vm93_vm15, %v92_v30  }
  0x98   :  { %v98_v31 = vld [vmem:[#allocation0] sm:$0x1] }
  0x99   :  { %100 = vst [vmem:[%s208_s1] sm:$0x1] %v98_v31 }

// kernel: positional_encoding.1
= control target key start
LH: loop header
LB: loop body
LE: loop exit
PB: predicated region body
PF: predicated region fallthrough
CT: control target
= control target key end

     0   :  { %7 = vsyncpa [#allocation3], 0  ;;  %s2168_s0 = inlined_call_operand.vmem [shape: f32[16,13], index: 0, kind: input, shape index: {}]   ;;  %s2169_s1 = inlined_call_operand.vmem [shape: f32[13,384], index: 1, kind: input, shape index: {}]   ;;  %s2170_s2 = inlined_call_operand.hbm [shape: f32[16,384], index: 2, kind: output, shape index: {}]  }
   0x1   :  { %9 = vsyncpa [#allocation3 + $0x1], 0  ;;  %s1804_s9 = smov 0   ;;  %s1806_s10 = smov 0  }
   0x2   :  { %s1808_s11 = smov 0   ;;  %s1810_s12 = smov 0  }
   0x3 LB: > { %s1825_s13 = sadd.s32 4294967295, %s1777_s12   ;;  %s1499_s14 = sadd.s32 4294967294, %s1777_s12   ;;  %s1777_s12 = sphi %s1810_s12, %s2176_s12   ;;  %s1773_s11 = sphi %s1808_s11, %s2175_s11   ;;  %s1769_s10 = sphi %s1806_s10, %s2174_s10   ;;  %s1765_s9 = sphi %s1804_s9, %s2173_s9  }
   0x4   : > { %s1829_s15 = sadd.s32 1, %s1777_s12   ;;  %s69_s16 = sadd.s32 1, %s1773_s11 }
   0x5   : > { %s66_s17 = ssub.s32 %s1777_s12, %s1829_s15  ;;  %p79_p0 = scmp.ne.s32.totalorder %s1773_s11, %s1769_s10 }
   0x6   : > { %p67_p1 = scmp.eq.s32.totalorder %s66_s17, 0  ;;  %p80_p2 = scmp.eq.s32.totalorder %s1825_s13, 1 }
   0x7   : > { %p85_p3 = scmp.ne.s32.totalorder %s1769_s10, %s1765_s9  ;;  %p86_p4 = scmp.eq.s32.totalorder %s1499_s14, 1 }
   0x8   : > { %s1840_s18 = scalar_select %p67_p1, %s1773_s11, %s69_s16  }
   0x9   : > { %p1842_p5 = por %p80_p2, %p79_p0  ;;  %p1846_p6 = por %p86_p4, %p85_p3 }
   0xa   : > { %p1502_p7 = scmp.ge.s32.totalorder %s1777_s12, 1  ;;  %p114_p8 = scmp.lt.s32.totalorder %s1777_s12, 3 }
   0xc   : > { %p115_p9 = pnand %p1502_p7, %p114_p8 }
   0xd   : > { %v141_v0 = vld [vmem:[%s2169_s1 + $0x8] sm:$0xff] (!%p115_p9)  ;;  %v144_v1 = vld [vmem:[%s2169_s1 + $0x20] sm:$0x1f] (!%p115_p9)  ;;  %vm150_vm0 = vcmask (!%p115_p9), 1044480   ;;  %v143_v5 = vld [vmem:[%s2169_s1 + $0x18] sm:$0x1f] (!%p115_p9) }
   0xe   : > { %118 = sbr.rel (%p115_p9) target bundleno = 409 (0x199), region = 28  ;;  %v140_v2 = vld [vmem:[%s2169_s1] sm:$0xff] (!%p115_p9)  ;;  %v155_v3 = vsel (!%p115_p9), %vm150_vm0, %v144_v1, 0  ;;  %v160_v4 = vand.u32 (!%p115_p9), 4294901760, %v141_v0  ;;  %v1779_v7 = vmov (!%p115_p9), 0.0|0.0   ;;  %v142_v8 = vld [vmem:[%s2169_s1 + $0x10] sm:$0xff] (!%p115_p9) }
   0xf   : > { %v162_v6 = vand.u32 (!%p115_p9), 4294901760, %v140_v2  ;;  %1603 = vmatprep.subr.bf16.mxu1 (!%p115_p9), %v1779_v7  ;;  %v164_v9 = vand.u32 (!%p115_p9), 4294901760, %v155_v3  ;;  %v152_v10 = vsel (!%p115_p9), %vm150_vm0, %v143_v5, 0  ;;  %v145_v11 = vld [vmem:[%s2169_s1 + $0x28] sm:$0x1f] (!%p115_p9)  ;;  %v652_v12 = vand.u32 (!%p115_p9), 4294901760, %v142_v8 }
  0x10   : > { %v1873_v13 = vsub.f32 (!%p115_p9), %v141_v0, %v160_v4  ;;  %v166_v14 = vand.u32 (!%p115_p9), 4294901760, %v152_v10  ;;  %v158_v16 = vsel (!%p115_p9), %vm150_vm0, %v145_v11, 0  ;;  %v1780_v17 = vmov (!%p115_p9), 0.0   ;;  %p135_p10 = scmp.lt.s32.totalorder (!%p115_p9), %s1825_s13, 1  ;;  %s132_s16 = sand.u32 (!%p115_p9), 1, %s1769_s10  }
  0x11   : > { %v1875_v15 = vsub.f32 (!%p115_p9), %v140_v2, %v162_v6  ;;  %228 = vmatprep.mubr.f32.mxu0 (!%p115_p9), %v1780_v17  ;;  %v1880_v18 = vpack.c.bf16 (!%p115_p9), %v164_v9, %v160_v4  ;;  %v1882_v19 = vsub.f32 (!%p115_p9), %v155_v3, %v164_v9  ;;  %v655_v20 = vand.u32 (!%p115_p9), 4294901760, %v158_v16  ;;  %s1641_s17 = smul.u32 (!%p115_p9), 24, %s132_s16  ;;  %s1788_s28 = smov (!%p115_p9), [#allocation2]  }
  0x12   : > { %v1884_v21 = vsub.f32 (!%p115_p9), %v142_v8, %v652_v12  ;;  %v1886_v22 = vpack.c.bf16 (!%p115_p9), %v166_v14, %v162_v6  ;;  %v1888_v23 = vsub.f32 (!%p115_p9), %v152_v10, %v166_v14  ;;  %v242_v24 = vand.u32 (!%p115_p9), 4294901760, %v1873_v13  ;;  %s1654_s22 = smul.u32 (!%p115_p9), 384, %s1825_s13  ;;  %s1719_s29 = sshll.u32 (!%p115_p9), %s1788_s28, 4  ;;  %s1720_s29 = int_to_ptr.vmem [resolvable:$false] %s1719_s29 }
  0x13   : > { %1580 = vmatprep.subr.bf16.mxu0 (!%p115_p9), %v1880_v18  ;;  %v1893_v25 = vpack.c.bf16 (!%p115_p9), %v655_v20, %v652_v12  ;;  %v1895_v26 = vsub.f32 (!%p115_p9), %v158_v16, %v655_v20  ;;  %v254_v27 = vand.u32 (!%p115_p9), 4294901760, %v1882_v19  ;;  %vm1781_vm1 = vmmov (!%p115_p9), 0   ;;  %s2106_s21 = scalar_lea.vmem (!%p115_p9), [#allocation2], %s1641_s17  ;;  %s1721_s30 = scalar_lea.vmem (!%p115_p9), %s1720_s29, 768 }
  0x14   : > { %1541 = vmatprep.mubr.msk.f32.mxu1 (!%p115_p9), %vm1781_vm1, %v1780_v17  ;;  %vm146_vm2 = vcmask (!%p115_p9), 105472   ;;  %1582 = vmatpush1.bf16.msra.mxu0 (!%p115_p9), %v1886_v22  ;;  %v243_v28 = vsub.f32 (!%p115_p9), %v1873_v13, %v242_v24  ;;  %v248_v29 = vand.u32 (!%p115_p9), 4294901760, %v1875_v15  ;;  %v260_v30 = vand.u32 (!%p115_p9), 4294901760, %v1888_v23  ;;  %s1440_s23 = sshll.u32 (!%p115_p9), %s2106_s21, 4  ;;  %s2123_s26 = scalar_lea.hbm (!%p115_p9), %s2170_s2, %s1654_s22  ;;  %s2125_s23 = int_to_ptr.vmem [resolvable:$true] %s1440_s23 }
  0x15   : > { %s136_s5 = scalar_select %p135_p10, %s1825_s13, 1  ;;  %v731_v31 = vand.u32 4294901760, %v1884_v21  ;;  %1605 = vmatpush3.bf16.msra.mxu1 %v1893_v25  ;;  %v255_v32 = vsub.f32 %v1882_v19, %v254_v27  ;;  %v738_v33 = vand.u32 4294901760, %v1895_v26  ;;  %v1587_v54 = vpack.c.bf16 %v1882_v19, %v1873_v13 }
  0x16   : > { %v244_v34 = vand.u32 4294901760, %v243_v28  ;;  %v249_v36 = vsub.f32 %v1875_v15, %v248_v29  ;;  %v261_v37 = vsub.f32 %v1888_v23, %v260_v30  ;;  %1606 = vmatprep.subr.bf16.mxu1 %v1779_v7  ;;  %v1589_v55 = vpack.c.bf16 %v1888_v23, %v1875_v15  ;;  %s1426_s13 = scalar_lea.sflag [#allocation3], %s132_s16  ;;  %s1715_s27 = scalar_lea.vmem %s2125_s23, 384 }
  0x17   : > { %s1503_s6 = sshll.u32 %s136_s5, 3  ;;  %v256_v38 = vand.u32 4294901760, %v255_v32  ;;  %v732_v40 = vsub.f32 %v1884_v21, %v731_v31  ;;  %v739_v41 = vsub.f32 %v1895_v26, %v738_v33  ;;  %v1610_v56 = vpack.c.bf16 %v1895_v26, %v1884_v21  ;;  %p1716_p11 = scmp.ne.s32.totalorder %s2125_s23, %s1715_s27 }
  0x18   : > { %s138_s14 = scalar_lea.vmem %s2168_s0, %s1503_s6  ;;  %v250_v45 = vand.u32 4294901760, %v249_v36  ;;  %v262_v46 = vand.u32 4294901760, %v261_v37  ;;  %v1595_v57 = vpack.c.bf16 %v254_v27, %v242_v24  ;;  %v1597_v58 = vpack.c.bf16 %v260_v30, %v248_v29  ;;  %p1722_p0 = scmp.lt.s32.totalorder %s2125_s23, %s1720_s29 }
  0x19   : > { %v139_v35 = vld [vmem:[%s138_s14] sm:$0xff]  ;;  %v1583_v43 = vpack.c.bf16 %v256_v38, %v244_v34  ;;  %v733_v47 = vand.u32 4294901760, %v732_v40  ;;  %v740_v48 = vand.u32 4294901760, %v739_v41  ;;  %v1616_v59 = vpack.c.bf16 %v738_v33, %v731_v31  ;;  %p1717_p12 = pnand %p1716_p11, %p1842_p5  ;;  %p1723_p1 = scmp.lt.s32.totalorder %s1721_s30, %s1715_s27 }
  0x1a   : > { %v148_v39 = vsel %vm146_vm2, %v139_v35, 0  ;;  %v1585_v51 = vpack.c.bf16 %v262_v46, %v250_v45  ;;  %v1782_v26 = vmov 683565275   ;;  %v1783_v30 = vmov 2475754826  }
  0x1b   : > { %v229_v42 = vand.u32 4294901760, %v148_v39  ;;  %1584 = vmatprep.subr.bf16.mxu0 %v1583_v43  ;;  %v1607_v52 = vpack.c.bf16 %v740_v48, %v733_v47  ;;  %v1784_v32 = vmov 2131351028   ;;  %v1785_v34 = vmov 2102212464   ;;  %p1718_p13 = pneg %p1717_p12  ;;  %p1724_p2 = por %p1723_p1, %p1722_p0 }
  0x1c   : > { %v1786_v36 = vmov 920167782   ;;  %v1787_v43 = vmov 1326507024  }
  0x1d   : > { %v230_v44 = vsub.f32 %v148_v39, %v229_v42  ;;  %p1725_p3 = pnand %p1724_p2, %p1718_p13 }
  0x1f   : > { %v231_v49 = vand.u32 4294901760, %v230_v44 }
  0x21   : > { %v232_v50 = vsub.f32 %v230_v44, %v231_v49 }
  0x23   : > { %v233_v53 = vand.u32 4294901760, %v232_v50 }
  0x25   : > { %234 = vmatmul.mubr.f32.vlgmr.msra.gmra.mrb[0].mxu0 %v233_v53  ;;  %1542 = vmatmul.mubr.f32.vlgmr.msra.gmra.mrb[0].mxu1 %v233_v53 }
  0x26   : > { %1586 = vmatpush1.bf16.msra.mxu0 %v1585_v51  ;;  %1608 = vmatpush3.bf16.msra.mxu1 %v1607_v52 }
  0x27   : > { %324 = vmatprep.mubr.f32.mxu0 %v1780_v17  ;;  %1588 = vmatprep.subr.bf16.mxu0 %v1587_v54 }
  0x28   : > { %1548 = vmatprep.mubr.msk.f32.mxu1 %vm1781_vm1, %v1780_v17  ;;  %1609 = vmatprep.subr.bf16.mxu1 %v1779_v7 }
  0x2d   : > { %326 = vmatmul.mubr.f32.vlgmr.msra.gmra.mrb[0].mxu0 %v229_v42  ;;  %1549 = vmatmul.mubr.f32.vlgmr.msra.gmra.mrb[0].mxu1 %v229_v42 }
  0x2e   : > { %1590 = vmatpush1.bf16.msra.mxu0 %v1589_v55  ;;  %1611 = vmatpush3.bf16.msra.mxu1 %v1610_v56 }
  0x2f   : > { %404 = vmatprep.mubr.f32.mxu0 %v1780_v17  ;;  %1592 = vmatprep.subr.bf16.mxu0 %v1880_v18 }
  0x30   : > { %1555 = vmatprep.mubr.msk.f32.mxu1 %vm1781_vm1, %v1780_v17  ;;  %1612 = vmatprep.subr.bf16.mxu1 %v1779_v7 }
  0x35   : > { %407 = vmatmul.mubr.f32.vlgmr.msra.gmra.mrb[0].mxu0 %v230_v44  ;;  %1556 = vmatmul.mubr.f32.vlgmr.msra.gmra.mrb[0].mxu1 %v230_v44 }
  0x36   : > { %1594 = vmatpush1.bf16.msra.mxu0 %v1886_v22  ;;  %1614 = vmatpush3.bf16.msra.mxu1 %v1893_v25 }
  0x37   : > { %481 = vmatprep.mubr.f32.mxu0 %v1780_v17  ;;  %1596 = vmatprep.subr.bf16.mxu0 %v1595_v57 }
  0x38   : > { %1562 = vmatprep.mubr.msk.f32.mxu1 %vm1781_vm1, %v1780_v17  ;;  %1615 = vmatprep.subr.bf16.mxu1 %v1779_v7 }
  0x3d   : > { %485 = vmatmul.mubr.f32.vlgmr.msra.gmra.mrb[0].mxu0 %v231_v49  ;;  %1563 = vmatmul.mubr.f32.vlgmr.msra.gmra.mrb[0].mxu1 %v231_v49 }
  0x3e   : > { %1598 = vmatpush1.bf16.msra.mxu0 %v1597_v58  ;;  %1617 = vmatpush3.bf16.msra.mxu1 %v1616_v59 }
  0x3f   : > { %567 = vmatprep.mubr.f32.mxu0 %v1780_v17  ;;  %1600 = vmatprep.subr.bf16.mxu0 %v1880_v18 }
  0x40   : > { %1569 = vmatprep.mubr.msk.f32.mxu1 %vm1781_vm1, %v1780_v17  ;;  %1618 = vmatprep.subr.bf16.mxu1 %v1779_v7 }
  0x45   : > { %569 = vmatmul.mubr.f32.vlgmr.msra.gmra.mrb[0].mxu0 %v229_v42  ;;  %1570 = vmatmul.mubr.f32.vlgmr.msra.gmra.mrb[0].mxu1 %v229_v42 }
  0x46   : > { %1602 = vmatpush1.bf16.msra.mxu0 %v1886_v22  ;;  %1620 = vmatpush3.bf16.msra.mxu1 %v1893_v25 }
  0x47   : > { %643 = vmatprep.mubr.f32.mxu0 %v1780_v17  ;;  %1576 = vmatprep.mubr.msk.f32.mxu1 %vm1781_vm1, %v1780_v17 }
  0x4d   : > { %645 = vmatmul.mubr.f32.vlgmr.msra.gmra.mrb[0].mxu0 %v229_v42  ;;  %1577 = vmatmul.mubr.f32.vlgmr.msra.gmra.mrb[0].mxu1 %v229_v42 }
 0x120   : > { %v1948_v60 = vpop.f32.mrb[0].mxu0  ;;  %v1950_v61 = vpop.f32.mrb[0].mxu1 }
 0x121   : > { %v1110_v62 = vand.u32 2147483647, %v1948_v60  ;;  %v1113_v63 = vand.u32 2139095040, %v1948_v60  ;;  %v1954_v0 = vpop.f32.mrb[1].mxu0  ;;  %v1578_v1 = vpop.f32.mrb[1].mxu1  ;;  %v1321_v3 = vand.u32 2139095040, %v1950_v61 }
 0x122   : > { %v1318_v2 = vand.u32 2147483647, %v1950_v61  ;;  %v1217_v8 = vand.u32 2139095040, %v1954_v0  ;;  %v1214_v23 = vand.u32 2147483647, %v1954_v0 }
 0x123   : > { %v1114_v4 = vshrl.u32 %v1113_v63, 23  ;;  %v1117_v5 = vand.u32 8388607, %v1110_v62  ;;  %v1322_v6 = vshrl.u32 %v1321_v3, 23 }
 0x124   : > { %v1325_v7 = vand.u32 8388607, %v1318_v2  ;;  %v1218_v11 = vshrl.u32 %v1217_v8, 23 }
 0x125   : > { %v1504_v9 = vadd.s32 4294967169, %v1114_v4  ;;  %v1512_v10 = vadd.s32 4294967169, %v1322_v6  ;;  %v1118_v13 = vor.u32 8388608, %v1117_v5 }
 0x126   : > { %v1326_v14 = vor.u32 8388608, %v1325_v7  ;;  %v1508_v16 = vadd.s32 4294967169, %v1218_v11 }
 0x127   : > { %v1120_v12 = vadd.s32 1, %v1504_v9  ;;  %v1328_v15 = vadd.s32 1, %v1512_v10  ;;  %v1963_v21 = vshll.u32 %v1118_v13, 8 }
 0x128   : > { %v1965_v22 = vshll.u32 %v1326_v14, 8  ;;  %v1968_v24 = vadd.s32 1, %v1508_v16 }
 0x129   : > { %vm1121_vm3 = vcmp.gt.s32.totalorder %v1120_v12, 0  ;;  %vm1329_vm4 = vcmp.gt.s32.totalorder %v1328_v15, 0 }
 0x12a   : > { %v1122_v17 = vsel %vm1121_vm3, %v1120_v12, 0  ;;  %v1330_v20 = vsel %vm1329_vm4, %v1328_v15, 0  ;;  %vm1225_vm9 = vcmp.gt.s32.totalorder %v1968_v24, 0 }
 0x12b   : > { %v1123_v18 = vshrl.u32 %v1122_v17, 5  ;;  %v1124_v19 = vand.u32 31, %v1122_v17  ;;  %v1971_v28 = vshrl.u32 %v1330_v20, 5  ;;  %v1332_v29 = vand.u32 31, %v1330_v20 }
 0x12d   : > { %v1125_v25 = vsub.s32 32, %v1124_v19  ;;  %v1127_v27 = vshll.u32 %v1782_v26, %v1124_v19  ;;  %v1130_v31 = vshll.u32 %v1783_v30, %v1124_v19  ;;  %v1133_v33 = vshll.u32 %v1784_v32, %v1124_v19 }
 0x12e   : > { %v1136_v35 = vshll.u32 %v1785_v34, %v1124_v19  ;;  %v1139_v37 = vshll.u32 %v1786_v36, %v1124_v19  ;;  %vm1142_vm5 = vcmp.lt.s32.totalorder %v1123_v18, 1  ;;  %vm1143_vm6 = vcmp.lt.s32.totalorder %v1123_v18, 2 }
 0x12f   : > { %v1128_v38 = vshrl.u32 %v1783_v30, %v1125_v25  ;;  %v1131_v39 = vshrl.u32 %v1784_v32, %v1125_v25  ;;  %v1134_v40 = vshrl.u32 %v1785_v34, %v1125_v25  ;;  %v1126_v41 = vshrl.u32 %v1782_v26, %v1125_v25 }
 0x130   : > { %v1137_v42 = vshrl.u32 %v1786_v36, %v1125_v25  ;;  %v1140_v44 = vshrl.u32 %v1787_v43, %v1125_v25  ;;  %v1333_v48 = vsub.s32 32, %v1332_v29  ;;  %vm1144_vm7 = vcmp.lt.s32.totalorder %v1123_v18, 3 }
 0x131   : > { %v1129_v45 = vor.u32 %v1128_v38, %v1127_v27  ;;  %v1132_v46 = vor.u32 %v1131_v39, %v1130_v31  ;;  %v1135_v47 = vor.u32 %v1134_v40, %v1133_v33  ;;  %vm1145_vm8 = vcmp.lt.s32.totalorder %v1123_v18, 4 }
 0x132   : > { %v1138_v49 = vor.u32 %v1137_v42, %v1136_v35  ;;  %v1141_v50 = vor.u32 %v1140_v44, %v1139_v37  ;;  %v1335_v58 = vshll.u32 %v1782_v26, %v1332_v29  ;;  %v1336_v1 = vshrl.u32 %v1783_v30, %v1333_v48 }
 0x133   : > { %v1146_v51 = vsel %vm1142_vm5, %v1126_v41, %v1129_v45  ;;  %v1147_v52 = vsel %vm1145_vm8, %v1135_v47, 2102212464  ;;  %v1150_v53 = vsel %vm1142_vm5, %v1129_v45, %v1132_v46  ;;  %v1154_v54 = vsel %vm1142_vm5, %v1132_v46, %v1135_v47 }
 0x134   : > { %v1148_v55 = vsel %vm1144_vm7, %v1132_v46, %v1147_v52  ;;  %v1151_v56 = vsel %vm1145_vm8, %v1138_v49, 920167782  ;;  %v1155_v57 = vsel %vm1145_vm8, %v1141_v50, 1326507024  ;;  %v1338_v3 = vshll.u32 %v1783_v30, %v1332_v29 }
 0x135   : > { %v1152_v59 = vsel %vm1144_vm7, %v1135_v47, %v1151_v56  ;;  %v1156_v63 = vsel %vm1144_vm7, %v1138_v49, %v1155_v57  ;;  %v1149_v4 = vsel %vm1143_vm6, %v1146_v51, %v1148_v55  ;;  %v1339_v7 = vshrl.u32 %v1784_v32, %v1333_v48 }
 0x136   : > { %v1153_v5 = vsel %vm1143_vm6, %v1150_v53, %v1152_v59  ;;  %v1157_v6 = vsel %vm1143_vm6, %v1154_v54, %v1156_v63  ;;  %v1337_v12 = vor.u32 %v1336_v1, %v1335_v58  ;;  %v1341_v14 = vshll.u32 %v1784_v32, %v1332_v29 }
 0x137   : > { %v1995_v8 = vmul.u32.u64.low %v1963_v21, %v1157_v6  ;;  %v1996_v9 = vmul.u32.u64.high %v1963_v21, %v1157_v6, %v1995_v8  ;;  %v1999_v10 = vmul.u32.u64.low %v1963_v21, %v1153_v5  ;;  %v2000_v11 = vmul.u32.u64.high %v1963_v21, %v1153_v5, %v1999_v10 }
 0x138   : > { %v1340_v13 = vor.u32 %v1339_v7, %v1338_v3  ;;  %v1342_v15 = vshrl.u32 %v1785_v34, %v1333_v48  ;;  %v1334_v16 = vshrl.u32 %v1782_v26, %v1333_v48  ;;  %v1344_v17 = vshll.u32 %v1785_v34, %v1332_v29 }
 0x139   : > { %v1345_v18 = vshrl.u32 %v1786_v36, %v1333_v48  ;;  %v1348_v19 = vshrl.u32 %v1787_v43, %v1333_v48  ;;  %v1165_v20 = vmul.u32 %v1963_v21, %v1149_v4  ;;  %v1347_v27 = vshll.u32 %v1786_v36, %v1332_v29 }
 0x13a   : > { %v1343_v25 = vor.u32 %v1342_v15, %v1341_v14  ;;  %vm1350_vm10 = vcmp.lt.s32.totalorder %v1971_v28, 1  ;;  %vm1167_vm11 = vc.u32 %v1996_v9, %v1999_v10  ;;  %v1168_v31 = vadd.s32 1, %v2000_v11 }
 0x13b   : > { %v1346_v33 = vor.u32 %v1345_v18, %v1344_v17  ;;  %vm1351_vm12 = vcmp.lt.s32.totalorder %v1971_v28, 2  ;;  %v1349_v35 = vor.u32 %v1348_v19, %v1347_v27  ;;  %vm1352_vm13 = vcmp.lt.s32.totalorder %v1971_v28, 3 }
 0x13c   : > { %vm1353_vm14 = vcmp.lt.s32.totalorder %v1971_v28, 4  ;;  %v1358_v37 = vsel %vm1350_vm10, %v1337_v12, %v1340_v13  ;;  %v1169_v21 = vsel %vm1167_vm11, %v1168_v31, %v2000_v11  ;;  %v1362_v39 = vsel %vm1350_vm10, %v1340_v13, %v1343_v25 }
 0x13d   : > { %v1355_v38 = vsel %vm1353_vm14, %v1343_v25, 2102212464  ;;  %v1359_v29 = vsel %vm1353_vm14, %v1346_v33, 920167782  ;;  %v1170_v40 = vadd.s32 %v1169_v21, %v1165_v20  ;;  %v1354_v41 = vsel %vm1350_vm10, %v1334_v16, %v1337_v12 }
 0x13e   : > { %v1360_v42 = vsel %vm1352_vm13, %v1343_v25, %v1359_v29  ;;  %v1363_v44 = vsel %vm1353_vm14, %v1349_v35, 1326507024  ;;  %v1356_v45 = vsel %vm1352_vm13, %v1340_v13, %v1355_v38  ;;  %v1226_v48 = vsel %vm1225_vm9, %v1968_v24, 0 }
 0x13f   : > { %v1361_v46 = vsel %vm1351_vm12, %v1358_v37, %v1360_v42  ;;  %v1364_v47 = vsel %vm1352_vm13, %v1346_v33, %v1363_v44  ;;  %v1171_v49 = vadd.s32 536870912, %v1170_v40  ;;  %v1357_v56 = vsel %vm1351_vm12, %v1354_v41, %v1356_v45 }
 0x140   : > { %v1365_v50 = vsel %vm1351_vm12, %v1362_v39, %v1364_v47  ;;  %v2027_v51 = vmul.u32.u64.low %v1965_v22, %v1361_v46  ;;  %v2028_v52 = vmul.u32.u64.high %v1965_v22, %v1361_v46, %v2027_v51  ;;  %v1221_v24 = vand.u32 8388607, %v1214_v23 }
 0x141   : > { %v2032_v53 = vmul.u32.u64.low %v1965_v22, %v1365_v50  ;;  %v2033_v54 = vmul.u32.u64.high %v1965_v22, %v1365_v50, %v2032_v53  ;;  %v2035_v55 = vshrl.u32 %v1171_v49, 30  ;;  %v1228_v57 = vand.u32 31, %v1226_v48 }
 0x142   : > { %v1376_v59 = vadd.s32 1, %v2028_v52  ;;  %v1373_v1 = vmul.u32 %v1965_v22, %v1357_v56  ;;  %v1222_v5 = vor.u32 8388608, %v1221_v24  ;;  %v1227_v13 = vshrl.u32 %v1226_v48, 5 }
 0x143   : > { %v1173_v58 = vshll.u32 %v2035_v55, 30  ;;  %v1229_v63 = vsub.s32 32, %v1228_v57  ;;  %vm1375_vm15 = vc.u32 %v2033_v54, %v2027_v51  ;;  %v1231_v28 = vshll.u32 %v1782_v26, %v1228_v57 }
 0x144   : > { %v1377_v4 = vsel %vm1375_vm15, %v1376_v59, %v2028_v52  ;;  %v1234_v8 = vshll.u32 %v1783_v30, %v1228_v57  ;;  %v1237_v22 = vshll.u32 %v1784_v32, %v1228_v57  ;;  %v1240_v20 = vshll.u32 %v1785_v34, %v1228_v57 }
 0x145   : > { %v1174_v3 = vsub.s32 %v1170_v40, %v1173_v58  ;;  %v1378_v6 = vadd.s32 %v1377_v4, %v1373_v1  ;;  %v1232_v7 = vshrl.u32 %v1783_v30, %v1229_v63  ;;  %v1235_v11 = vshrl.u32 %v1784_v32, %v1229_v63 }
 0x146   : > { %v1238_v14 = vshrl.u32 %v1785_v34, %v1229_v63  ;;  %v1241_v25 = vshrl.u32 %v1786_v36, %v1229_v63  ;;  %v1243_v30 = vshll.u32 %v1786_v36, %v1228_v57  ;;  %v1244_v31 = vshrl.u32 %v1787_v43, %v1229_v63 }
 0x147   : > { %v1176_v12 = vsub.s32 0, %v1174_v3  ;;  %v1379_v15 = vadd.s32 536870912, %v1378_v6  ;;  %v1233_v16 = vor.u32 %v1232_v7, %v1231_v28  ;;  %v1236_v17 = vor.u32 %v1235_v11, %v1234_v8 }
 0x148   : > { %v1239_v19 = vor.u32 %v1238_v14, %v1237_v22  ;;  %v1262_v33 = vshll.u32 %v1222_v5, 8  ;;  %v1166_v32 = vadd.s32 %v1999_v10, %v1996_v9  ;;  %v1242_v37 = vor.u32 %v1241_v25, %v1240_v20 }
 0x149   : > { %v1505_v18 = vmin.u32 %v1176_v12, %v1174_v3  ;;  %v2055_v27 = vshrl.u32 %v1379_v15, 30  ;;  %vm1246_vm0 = vcmp.lt.s32.totalorder %v1227_v13, 1  ;;  %v1245_v38 = vor.u32 %v1244_v31, %v1243_v30 }
 0x14a   : > { %vm1248_vm1 = vcmp.lt.s32.totalorder %v1227_v13, 3  ;;  %vm1249_vm2 = vcmp.lt.s32.totalorder %v1227_v13, 4  ;;  %v1254_v29 = vsel %vm1246_vm0, %v1233_v16, %v1236_v17  ;;  %v1258_v36 = vsel %vm1246_vm0, %v1236_v17, %v1239_v19 }
 0x14b   : > { %v1178_v35 = vclz %v1505_v18  ;;  %v1381_v21 = vshll.u32 %v2055_v27, 30  ;;  %v1255_v39 = vsel %vm1249_vm2, %v1242_v37, 920167782  ;;  %v1251_v43 = vsel %vm1249_vm2, %v1239_v19, 2102212464 }
 0x14c   : > { %v1256_v41 = vsel %vm1248_vm1, %v1239_v19, %v1255_v39  ;;  %v1259_v42 = vsel %vm1249_vm2, %v1245_v38, 1326507024  ;;  %v1230_v9 = vshrl.u32 %v1782_v26, %v1229_v63  ;;  %vm1247_vm4 = vcmp.lt.s32.totalorder %v1227_v13, 2 }
 0x14d   : > { %v1506_v34 = vadd.s32 4294967294, %v1178_v35  ;;  %v1382_v40 = vsub.s32 %v1378_v6, %v1381_v21  ;;  %v1260_v10 = vsel %vm1248_vm1, %v1242_v37, %v1259_v42  ;;  %v1257_v46 = vsel %vm1247_vm4, %v1254_v29, %v1256_v41 }
 0x14e   : > { %v1261_v47 = vsel %vm1247_vm4, %v1258_v36, %v1260_v10  ;;  %v1250_v50 = vsel %vm1246_vm0, %v1230_v9, %v1233_v16  ;;  %v1252_v52 = vsel %vm1248_vm1, %v1236_v17, %v1251_v43  ;;  %v1196_v8 = vsub.s32 4, %v2035_v55 }
 0x14f   : > { %vm1507_vm3 = vcmp.lt.s32.totalorder %v1506_v34, 0  ;;  %v1384_v45 = vsub.s32 0, %v1382_v40  ;;  %v2071_v24 = vmul.u32.u64.low %v1262_v33, %v1261_v47  ;;  %v2072_v57 = vmul.u32.u64.high %v1262_v33, %v1261_v47, %v2071_v24 }
 0x150   : > { %v1181_v44 = vsel %vm1507_vm3, 0, %v1506_v34  ;;  %v2074_v59 = vmul.u32.u64.low %v1262_v33, %v1257_v46  ;;  %v2075_v63 = vmul.u32.u64.high %v1262_v33, %v1257_v46, %v2074_v59  ;;  %v1253_v28 = vsel %vm1247_vm4, %v1250_v50, %v1252_v52 }
 0x151   : > { %v1182_v48 = vsub.s32 32, %v1181_v44  ;;  %v1186_v49 = vsub.s32 4294967266, %v1181_v44  ;;  %v1183_v53 = vshll.u32 %v1174_v3, %v1181_v44  ;;  %v1513_v56 = vmin.u32 %v1384_v45, %v1382_v40 }
 0x152   : > { %vm1271_vm5 = vc.u32 %v2072_v57, %v2074_v59  ;;  %v1272_v7 = vadd.s32 1, %v2075_v63  ;;  %v1269_v11 = vmul.u32 %v1262_v33, %v1253_v28  ;;  %v1374_v13 = vadd.s32 %v2027_v51, %v2033_v54 }
 0x153   : > { %v1184_v26 = vshrl.u32 %v1166_v32, %v1182_v48  ;;  %v1187_v58 = vadd.s32 127, %v1186_v49  ;;  %v1386_v1 = vclz %v1513_v56  ;;  %vm1112_vm7 = vcmp.lt.s32.totalorder %v1948_v60, 0 }
 0x154   : > { %v1273_v15 = vsel %vm1271_vm5, %v1272_v7, %v2075_v63  ;;  %v1197_v33 = vsel %vm1112_vm7, %v1196_v8, %v2035_v55  ;;  %vm1111_vm8 = vcmp.le.f32.partialorder %v1110_v62, 0.7853982  ;;  %v1404_v39 = vsub.s32 4, %v2055_v27 }
 0x155   : > { %v1185_v4 = vor.u32 %v1184_v26, %v1183_v53  ;;  %v1188_v5 = vshll.u32 %v1187_v58, 23  ;;  %v1514_v6 = vadd.s32 4294967294, %v1386_v1  ;;  %v1274_v18 = vadd.s32 %v1273_v15, %v1269_v11 }
 0x156   : > { %v1199_v29 = vsel %vm1111_vm8, 0, %v1197_v33  ;;  %vm1320_vm9 = vcmp.lt.s32.totalorder %v1950_v61, 0  ;;  %vm1319_vm10 = vcmp.le.f32.partialorder %v1318_v2, 0.7853982  ;;  %v1270_v24 = vadd.s32 %v2074_v59, %v2072_v57 }
 0x157   : > { %v1189_v3 = vor.u32 4788187, %v1188_v5  ;;  %vm1515_vm6 = vcmp.lt.s32.totalorder %v1514_v6, 0  ;;  %v1192_v22 = vcvt.s32.f32 %v1185_v4  ;;  %v1275_v31 = vadd.s32 536870912, %v1274_v18 }
 0x158   : > { %v1389_v14 = vsel %vm1515_vm6, 0, %v1514_v6  ;;  %v1203_v42 = vadd.s32 3, %v1199_v29  ;;  %v1405_v9 = vsel %vm1320_vm9, %v1404_v39, %v2055_v27  ;;  %vm1202_vm14 = vweird.f32 %v1948_v60 }
 0x159   : > { %v1190_v12 = vand.u32 2147483647, %v1189_v3  ;;  %v1390_v16 = vsub.s32 32, %v1389_v14  ;;  %v1394_v17 = vsub.s32 4294967266, %v1389_v14  ;;  %v1391_v20 = vshll.u32 %v1382_v40, %v1389_v14 }
 0x15a   : > { %v2088_v21 = vshrl.u32 %v1275_v31, 30  ;;  %v1204_v46 = vand.u32 3, %v1203_v42  ;;  %v1407_v48 = vsel %vm1319_vm10, 0, %v1405_v9  ;;  %vm1410_vm3 = vweird.f32 %v1950_v61 }
 0x15b   : > { %v1193_v19 = vmul.f32 %v1192_v22, %v1190_v12  ;;  %v1392_v25 = vshrl.u32 %v1374_v13, %v1390_v16  ;;  %v1395_v30 = vadd.s32 127, %v1394_v17  ;;  %v1411_v53 = vadd.s32 3, %v1407_v48 }
 0x15c   : > { %v1277_v34 = vshll.u32 %v2088_v21, 30  ;;  %vm1206_vm12 = vcmp.eq.s32.totalorder %v1204_v46, 0  ;;  %vm1209_vm13 = vcmp.eq.s32.totalorder %v1204_v46, 2  ;;  %vm1205_vm15 = vcmp.lt.s32.totalorder %v1204_v46, 2 }
 0x15d   : > { %v1194_v32 = vxor.u32 2147483648, %v1193_v19  ;;  %v1393_v35 = vor.u32 %v1392_v25, %v1391_v20  ;;  %v1396_v37 = vshll.u32 %v1395_v30, 23  ;;  %v1412_v7 = vand.u32 3, %v1411_v53 }
 0x15e   : > { %v1278_v40 = vsub.s32 %v1274_v18, %v1277_v34  ;;  %v1300_v17 = vsub.s32 4, %v2088_v21  ;;  %vm1216_vm4 = vcmp.lt.s32.totalorder %v1954_v0, 0  ;;  %vm1215_vm5 = vcmp.le.f32.partialorder %v1214_v23, 0.7853982 }
 0x15f   : > { %v1195_v51 = vsel %vm1112_vm7, %v1194_v32, %v1193_v19  ;;  %v1397_v38 = vor.u32 4788187, %v1396_v37  ;;  %v1400_v36 = vcvt.s32.f32 %v1393_v35  ;;  %vm1417_vm0 = vcmp.eq.s32.totalorder %v1412_v7, 2 }
 0x160   : > { %v1198_v54 = vsel %vm1111_vm8, %v1948_v60, %v1195_v51  ;;  %v1280_v41 = vsub.s32 0, %v1278_v40  ;;  %vm1414_vm1 = vcmp.eq.s32.totalorder %v1412_v7, 0  ;;  %vm1413_vm2 = vcmp.lt.s32.totalorder %v1412_v7, 2 }
 0x161   : > { %1703 = vcosq.f32 %v1198_v54  ;;  %v1398_v55 = vand.u32 2147483647, %v1397_v38  ;;  %v1301_v31 = vsel %vm1216_vm4, %v1300_v17, %v2088_v21 }
 0x162   : > { %1705 = vsinq.f32 %v1198_v54  ;;  %v1509_v10 = vmin.u32 %v1280_v41, %v1278_v40  ;;  %v1303_v33 = vsel %vm1215_vm5, 0, %v1301_v31 }
 0x163   : > { %v1401_v43 = vmul.f32 %v1400_v36, %v1398_v55 }
 0x164   : > { %v1282_v45 = vclz %v1509_v10 }
 0x165   : > { %v1402_v62 = vxor.u32 2147483648, %v1401_v43 }
 0x166   : > { %v1510_v49 = vadd.s32 4294967294, %v1282_v45 }
 0x167   : > { %v1403_v44 = vsel %vm1320_vm9, %v1402_v62, %v1401_v43  ;;  %vm1306_vm9 = vweird.f32 %v1954_v0 }
 0x168   : > { %v1406_v47 = vsel %vm1319_vm10, %v1950_v61, %v1403_v44  ;;  %vm1511_vm11 = vcmp.lt.s32.totalorder %v1510_v49, 0  ;;  %v1307_v61 = vadd.s32 3, %v1303_v33 }
 0x169   : > { %1707 = vcosq.f32 %v1406_v47  ;;  %v1285_v56 = vsel %vm1511_vm11, 0, %v1510_v49 }
 0x16a   : > { %1709 = vsinq.f32 %v1406_v47  ;;  %v1286_v26 = vsub.s32 32, %v1285_v56  ;;  %v1290_v58 = vsub.s32 4294967266, %v1285_v56  ;;  %v1287_v4 = vshll.u32 %v1278_v40, %v1285_v56 }
 0x16b   : > { %v1704_v50 = vpop.eup %1703  ;;  %v1308_v35 = vand.u32 3, %v1307_v61 }
 0x16c   : > { %v1706_v52 = vpop.eup %1705  ;;  %v1210_v27 = vxor.u32 2147483648, %v1704_v50  ;;  %v1288_v5 = vshrl.u32 %v1270_v24, %v1286_v26  ;;  %v1291_v28 = vadd.s32 127, %v1290_v58 }
 0x16d   : > { %v1207_v2 = vxor.u32 2147483648, %v1706_v52  ;;  %vm1313_vm6 = vcmp.eq.s32.totalorder %v1308_v35, 2  ;;  %vm1310_vm7 = vcmp.eq.s32.totalorder %v1308_v35, 0  ;;  %vm1309_vm8 = vcmp.lt.s32.totalorder %v1308_v35, 2 }
 0x16e   : > { %v1211_v63 = vsel %vm1209_vm13, %v1210_v27, %v1706_v52  ;;  %v1289_v8 = vor.u32 %v1288_v5, %v1287_v4  ;;  %v1292_v11 = vshll.u32 %v1291_v28, 23 }
 0x16f   : > { %v1208_v1 = vsel %vm1206_vm12, %v1704_v50, %v1207_v2 }
 0x170   : > { %v1212_v6 = vsel %vm1205_vm15, %v1208_v1, %v1211_v63  ;;  %v1293_v59 = vor.u32 4788187, %v1292_v11  ;;  %v1296_v14 = vcvt.s32.f32 %v1289_v8 }
 0x171   : > { %v1213_v3 = vsel %vm1202_vm14, nan, %v1212_v6 }
 0x172   : > { %1422 = vst [vmem:[%s2106_s21] sm:$0xff] %v1213_v3  ;;  %v1294_v60 = vand.u32 2147483647, %v1293_v59 }
 0x173   : > { %v1708_v57 = vpop.eup %1707 }
 0x174   : > { %v1710_v12 = vpop.eup %1709  ;;  %v1418_v22 = vxor.u32 2147483648, %v1708_v57  ;;  %v1297_v16 = vmul.f32 %v1296_v14, %v1294_v60 }
 0x175   : > { %v1415_v15 = vxor.u32 2147483648, %v1710_v12 }
 0x176   : > { %v1419_v13 = vsel %vm1417_vm0, %v1418_v22, %v1710_v12  ;;  %v1298_v20 = vxor.u32 2147483648, %v1297_v16 }
 0x177   : > { %v1416_v18 = vsel %vm1414_vm1, %v1708_v57, %v1415_v15 }
 0x178   : > { %v1420_v19 = vsel %vm1413_vm2, %v1416_v18, %v1419_v13  ;;  %v1299_v30 = vsel %vm1216_vm4, %v1298_v20, %v1297_v16 }
 0x179   : > { %v1421_v25 = vsel %vm1410_vm3, nan, %v1420_v19  ;;  %v1302_v32 = vsel %vm1215_vm5, %v1954_v0, %v1299_v30 }
 0x17a   : > { %1424 = vst [vmem:[%s2106_s21 + $0x10] sm:$0xff] %v1421_v25  ;;  %1711 = vcosq.f32 %v1302_v32 }
 0x17b   : > { %1713 = vsinq.f32 %v1302_v32 }
 0x184   : > { %v1712_v37 = vpop.eup %1711 }
 0x185   : > { %v1714_v51 = vpop.eup %1713  ;;  %v1314_v54 = vxor.u32 2147483648, %v1712_v37 }
 0x186   : > { %v1311_v38 = vxor.u32 2147483648, %v1714_v51 }
 0x187   : > { %v1315_v23 = vsel %vm1313_vm6, %v1314_v54, %v1714_v51 }
 0x188   : > { %v1312_v21 = vsel %vm1310_vm7, %v1712_v37, %v1311_v38 }
 0x189   : > { %v1316_v34 = vsel %vm1309_vm8, %v1312_v21, %v1315_v23 }
 0x18a   : > { %v1317_v29 = vsel %vm1306_vm9, nan, %v1316_v34 }
 0x18b   : > { %1423 = vst [vmem:[%s2106_s21 + $0x8] sm:$0xff] %v1317_v29 }
 0x18c   : > { %1728 = shalt.err (!%p1725_p3)
}
 0x18d   : > { %s1729_s3 = scalar_lea.hbm %s2123_s26, 384  ;;  %s1733_s6 = scalar_lea.hbm %s2170_s2, 768 }
 0x18e   : > { %p1730_p4 = scmp.ne.s32.totalorder %s2123_s26, %s1729_s3  ;;  %p1734_p9 = scmp.lt.u32.totalorder %s2123_s26, %s2170_s2 }
 0x18f   : > { %p1735_p10 = scmp.lt.u32.totalorder %s1733_s6, %s1729_s3  ;;  %p1737_p12 = scmp.lt.u32.totalorder %s1729_s3, %s2123_s26 }
 0x190   : > { %p1731_p7 = pnand %p1730_p4, %p1842_p5 }
 0x191   : > { %p1736_p11 = por %p1735_p10, %p1734_p9 }
 0x192   : > { %p1732_p8 = pneg %p1731_p7 }
 0x193   : > { %p1738_p13 = por %p1737_p12, %p1736_p11 }
 0x195   : > { %p1739_p0 = pnand %p1738_p13, %p1732_p8 }
 0x197   : > { %1742 = shalt.err (!%p1739_p0)
}
 0x198   : > { %1655 = dma.vmem_to_hbm [thread:$0]  (%p1842_p5), %s2125_s23, 384, %s2123_s26, %s1426_s13  }
 0x199 PF: > { %p1661_p1 = scmp.ge.s32.totalorder %s1777_s12, 2  ;;  %s1452_s14 = sand.u32 1, %s1765_s9  }
 0x19a   : > { %s1453_s16 = scalar_lea.sflag [#allocation3], %s1452_s14 }
 0x19b   : > { %p1658_p2 = pnand %p1661_p1, %p1846_p6 }
 0x19d   : > { %1760 = dma.done.wait (!%p1658_p2), %s1453_s16, 384  }
 0x19e   : > { %1762 = vsyncadd (!%p1658_p2), %s1453_s16, 4294966912  ;;  %p12_p3 = scmp.ge.s32.totalorder %s1829_s15, 4   ;;  %s2173_s9 = smov %s1769_s10 }
 0x19f   : > { %s2174_s10 = smov %s1773_s11  ;;  %s2175_s11 = smov %s1840_s18 }
 0x1a0   : > { %s2176_s12 = smov %s1829_s15  ;;  %14 = sbr.rel (!%p12_p3) target bundleno = 3 (0x3), region = 63 }
 0x1a7   :  { %1458 = vsyncpa [#allocation3], 1 }
 0x1a8   :  { %1460 = vsyncpa [#allocation3 + $0x1], 1 }

</bundles_post_ra>
